<compile_context>
chip_gen: v7x
topology: tpu7x:2x2x1
jax: 0.10.0
libtpu: 0.0.40
codegen_flags: <defaults>
</compile_context>

<pallas_src>
import jax
import jax.numpy as jnp
from jax import lax
from jax.experimental import pallas as pl
from jax.experimental.pallas import tpu as pltpu

GAMMA = 0.99

HIDDEN = 32                    # hidden width of the (synthetic) QBayesNetwork
STATE_DIM = 4                  # NChain state encoded as a one-hot vector
NUM_ACTIONS = 2
OBS_DIM = STATE_DIM + 1 + 1    # [state, action, reward]

LANES = 128                    # TPU lane width
S_OFF = HIDDEN                 # obs state lanes 32:36
A_LANE = HIDDEN + STATE_DIM    # obs action lane 36
R_LANE = A_LANE + 1            # obs reward lane 37
Q_OFF = HIDDEN                 # output lanes 32:34 carry q values
B_LANE = 0                     # output lane 0 carries b_est

TILE_T = 256                   # rows per grid block (>=128 v5e, >=256 v6e/v7x)


def _round_up(x, m):
    return ((x + m - 1) // m) * m


# ---------------------------------------------------------------------------
# Fused kernel: TILE_T independent EmpiricalTarget.forward steps per block.
# ---------------------------------------------------------------------------
def _empirical_target_kernel(d_ref, w_ref, b_ref, o_ref):
    """
    d_ref : (tile, 256) bf16   lanes   0:128 = x1  = [h0 | s, a, r   | 0...]
                               lanes 128:256 = x2o = [0  | s', a, r' | 0...]
    w_ref : (128, 128) bf16    rows 0:32  cols 0:32  = W_hh
                               rows 32:38 cols 0:32  = W_ih
                               rows 0:32  cols 32:34 = W_q        (rest zero)
    b_ref : (1, 128)  f32      cols 0:32 = b_h, cols 32:34 = b_q  (rest zero)
    o_ref : (tile, 128) f32    lane 0 = b_est, lanes 32:34 = q_vals
    """
    w_mid = w_ref[...]
    b_cat = b_ref[...]

    lanes = lax.broadcasted_iota(jnp.int32, (1, LANES), 1)
    h_mask = lanes < HIDDEN
    q_mask = (lanes >= Q_OFF) & (lanes < Q_OFF + NUM_ACTIONS)

    x1 = d_ref[:, 0:LANES]                                   # bf16 (tile, 128)
    x2o = d_ref[:, LANES:2 * LANES].astype(jnp.float32)      # obs2 slab, f32

    # step 1: h1 = tanh(h0 @ W_hh + obs1 @ W_ih + b_h), exact zero outside 0:32
    y1 = jnp.dot(x1, w_mid, preferred_element_type=jnp.float32) + b_cat
    h1 = jnp.where(h_mask, jnp.tanh(y1), 0.0)

    # step 2: one MXU pass -> h2_pre in lanes 0:32 AND q1 = h1 @ W_q + b_q in 32:34
    x2 = (h1 + x2o).astype(jnp.bfloat16)                     # [h1 | s', a, r']
    y2 = jnp.dot(x2, w_mid, preferred_element_type=jnp.float32) + b_cat
    q1 = jnp.where(q_mask, y2, 0.0)
    h2 = jnp.where(h_mask, jnp.tanh(y2), 0.0).astype(jnp.bfloat16)

    # step 3: q2 = h2 @ W_q + b_q lands in lanes 32:34 of the same fused block
    y3 = jnp.dot(h2, w_mid, preferred_element_type=jnp.float32) + b_cat
    next_q_max = jnp.max(jnp.where(q_mask, y3, -1e30), axis=-1, keepdims=True)

    # env reward sits in lane R_LANE of the obs2 half (per-row XLU reduce)
    r_env = jnp.sum(jnp.where(lanes == R_LANE, x2o, 0.0), axis=-1, keepdims=True)
    b_est = r_env + GAMMA * next_q_max                       # (tile, 1)

    # Lane-dense packed output: lane 0 = b_est, lanes 32:34 = q_vals
    o_ref[...] = q1 + jnp.where(lanes == B_LANE, b_est, 0.0)


# ---------------------------------------------------------------------------
# Parameter packing (done once).
# ---------------------------------------------------------------------------
def init_params(key):
    k1, k2, k3, k4, k5 = jax.random.split(key, 5)
    scale = 0.1
    w_ih = scale * jax.random.normal(k1, (OBS_DIM, HIDDEN), jnp.float32)
    w_hh = scale * jax.random.normal(k2, (HIDDEN, HIDDEN), jnp.float32)
    b_h = scale * jax.random.normal(k3, (1, HIDDEN), jnp.float32)
    w_q = scale * jax.random.normal(k4, (HIDDEN, NUM_ACTIONS), jnp.float32)
    b_q = scale * jax.random.normal(k5, (1, NUM_ACTIONS), jnp.float32)
    return (w_ih, w_hh, b_h, w_q, b_q)


def pack_params(params):
    """Pack the Q-network into one fused (128,128) bf16 matrix + (1,128) f32 bias."""
    w_ih, w_hh, b_h, w_q, b_q = params
    w = jnp.zeros((LANES, LANES), jnp.float32)
    w = w.at[0:HIDDEN, 0:HIDDEN].set(w_hh)
    w = w.at[HIDDEN:HIDDEN + OBS_DIM, 0:HIDDEN].set(w_ih)
    w = w.at[0:HIDDEN, Q_OFF:Q_OFF + NUM_ACTIONS].set(w_q)       # fused Q head
    b = jnp.zeros((1, LANES), jnp.float32)
    b = b.at[0, 0:HIDDEN].set(b_h.reshape(-1))
    b = b.at[0, Q_OFF:Q_OFF + NUM_ACTIONS].set(b_q.reshape(-1))
    return w.astype(jnp.bfloat16), b


# ---------------------------------------------------------------------------
# Wrapper: vectorized env step + lane-dense packing + one pallas_call.
# ---------------------------------------------------------------------------
def empirical_target_forward_steps(hidden_states, current_states, actions,
                                   rewards, packed_params, noise_key):
    """T independent EmpiricalTarget.forward steps fused into ONE pallas_call."""
    w_mid, b_cat = packed_params
    T = hidden_states.shape[0]
    actions = actions.reshape(T).astype(jnp.float32)
    rewards = rewards.reshape(T).astype(jnp.float32)

    # --- fused NChain env.step([action]) + Gaussian state noise (vectorized) ---
    state_idx = jnp.argmax(current_states, axis=-1)     # NChainState.from_tensor
    act_i = actions.astype(jnp.int32)
    next_idx = jnp.where(act_i == 0, jnp.minimum(state_idx + 1, STATE_DIM - 1), 0)
    r_env = jnp.where(act_i == 0,
                      jnp.where(state_idx == STATE_DIM - 1, 10.0, 0.0),
                      2.0).astype(jnp.float32)
    noise = 0.2 * jax.random.normal(noise_key, (T, STATE_DIM), jnp.float32)
    next_state = jax.nn.one_hot(next_idx, STATE_DIM, dtype=jnp.float32) + noise

    # --- lane-dense (T, 256) data slab: [x1 | obs2] per row ---
    data = jnp.zeros((T, 2 * LANES), jnp.float32)
    data = data.at[:, 0:HIDDEN].set(hidden_states.reshape(T, HIDDEN))
    data = data.at[:, S_OFF:S_OFF + STATE_DIM].set(current_states.reshape(T, STATE_DIM))
    data = data.at[:, A_LANE].set(actions)
    data = data.at[:, R_LANE].set(rewards)
    data = data.at[:, LANES + S_OFF:LANES + S_OFF + STATE_DIM].set(next_state)
    data = data.at[:, LANES + A_LANE].set(actions)
    data = data.at[:, LANES + R_LANE].set(r_env)
    data = data.astype(jnp.bfloat16)

    tile = min(TILE_T, _round_up(T, 16))     # multiple of 16 (bf16 sublane pack)
    t_pad = _round_up(T, tile)
    if t_pad != T:
        data = jnp.pad(data, ((0, t_pad - T), (0, 0)))   # pad rows: garbage sliced off

    out = pl.pallas_call(
        _empirical_target_kernel,
        out_shape=jax.ShapeDtypeStruct((t_pad, LANES), jnp.float32),
        grid_spec=pltpu.PrefetchScalarGridSpec(
            num_scalar_prefetch=0,
            grid=(t_pad // tile,),
            in_specs=[
                # per-block sublane+lane dense data tile
                pl.BlockSpec((tile, 2 * LANES), lambda i: (i, 0)),
                # fused weights + bias: constant index -> DMA'd once, VMEM-resident
                pl.BlockSpec((LANES, LANES), lambda i: (0, 0)),
                pl.BlockSpec((1, LANES), lambda i: (0, 0)),
            ],
            out_specs=pl.BlockSpec((tile, LANES), lambda i: (i, 0)),
        ),
        compiler_params=pltpu.CompilerParams(
            dimension_semantics=("parallel",)),   # blocks independent (v7x 2 TCs)
    )(data, w_mid, b_cat)

    q_vals = out[:T, Q_OFF:Q_OFF + NUM_ACTIONS]
    b_est = out[:T, B_LANE]
    return b_est, q_vals


def empirical_target_forward(hidden_state, current_state, action, rewards,
                             packed_params, noise_key):
    """Single-step forward matching EmpiricalTarget.forward -> (b_est, q_vals)."""
    return empirical_target_forward_steps(
        hidden_state.reshape(1, HIDDEN),
        current_state.reshape(1, STATE_DIM),
        jnp.asarray(action, jnp.float32).reshape(1),
        jnp.asarray(rewards, jnp.float32).reshape(1),
        packed_params, noise_key)


# ---------------------------------------------------------------------------
# Pure-JAX f32 reference (same noise key -> same noise stream).
# ---------------------------------------------------------------------------
def _reference_forward(hidden_states, current_states, actions, rewards,
                       params, noise_key):
    w_ih, w_hh, b_h, w_q, b_q = params
    T = hidden_states.shape[0]
    actions = actions.reshape(T, 1).astype(jnp.float32)
    rewards = rewards.reshape(T, 1).astype(jnp.float32)
    obs1 = jnp.concatenate([current_states, actions, rewards], axis=-1)
    h1 = jnp.tanh(obs1 @ w_ih + hidden_states @ w_hh + b_h)
    q1 = h1 @ w_q + b_q
    state_idx = jnp.argmax(current_states, axis=-1)
    act_i = actions[:, 0].astype(jnp.int32)
    next_idx = jnp.where(act_i == 0, jnp.minimum(state_idx + 1, STATE_DIM - 1), 0)
    r_env = jnp.where(act_i == 0,
                      jnp.where(state_idx == STATE_DIM - 1, 10.0, 0.0), 2.0)
    noise = 0.2 * jax.random.normal(noise_key, (T, STATE_DIM), jnp.float32)
    next_state = jax.nn.one_hot(next_idx, STATE_DIM, dtype=jnp.float32) + noise
    obs2 = jnp.concatenate([next_state, actions, r_env[:, None]], axis=-1)
    h2 = jnp.tanh(obs2 @ w_ih + h1 @ w_hh + b_h)
    q2 = h2 @ w_q + b_q
    b_est = r_env + GAMMA * jnp.max(q2, axis=-1)
    return b_est, q1


if __name__ == "__main__":
    root = jax.random.PRNGKey(0)
    k_params, k_hidden, k_batch, k_noise1, k_noise2 = jax.random.split(root, 5)

    params = init_params(k_params)
    packed = pack_params(params)          # packed once, reused by every call

    # --- single forward (T=1), matching the PyTorch forward signature ---
    hidden_state = jax.random.normal(k_hidden, (1, HIDDEN), jnp.float32)
    current_state = jax.nn.one_hot(1, STATE_DIM, dtype=jnp.float32).reshape(1, STATE_DIM)
    action = jnp.array([1.0], jnp.float32)
    rewards = jnp.array([0.5], jnp.float32)

    fwd = jax.jit(empirical_target_forward)
    b_est, q_vals = fwd(hidden_state, current_state, action, rewards, packed, k_noise1)
    jax.block_until_ready((b_est, q_vals))
    assert b_est.shape == (1,)
    assert q_vals.shape == (1, NUM_ACTIONS)

    b_ref, q_ref = _reference_forward(hidden_state, current_state, action,
                                      rewards, params, k_noise1)
    assert jnp.allclose(q_vals, q_ref, atol=3e-2, rtol=3e-2), (q_vals, q_ref)
    assert jnp.allclose(b_est, b_ref, atol=1.5e-1, rtol=5e-2), (b_est, b_ref)
    assert bool(jnp.isfinite(b_est).all())

    # --- T steps in one launch: weights DMA'd to VMEM once, batched matmuls ---
    T = 32
    hs = jax.random.normal(k_batch, (T, HIDDEN), jnp.float32)
    cs = jax.nn.one_hot(jnp.arange(T) % STATE_DIM, STATE_DIM, dtype=jnp.float32)
    acts = (jnp.arange(T) % NUM_ACTIONS).astype(jnp.float32)
    rws = 0.1 * jnp.arange(T, dtype=jnp.float32)

    fwd_steps = jax.jit(empirical_target_forward_steps)
    b_T, q_T = fwd_steps(hs, cs, acts, rws, packed, k_noise2)
    jax.block_until_ready((b_T, q_T))
    assert b_T.shape == (T,)
    assert q_T.shape == (T, NUM_ACTIONS)

    b_refT, q_refT = _reference_forward(hs, cs, acts, rws, params, k_noise2)
    assert jnp.allclose(q_T, q_refT, atol=3e-2, rtol=3e-2)
    assert jnp.allclose(b_T, b_refT, atol=1.5e-1, rtol=5e-2)

    print("KERNEL_OK")
</pallas_src>

<mosaic_0001>
module attributes {stable_mosaic.version = 11 : i64} {
  func.func @_empirical_target_kernel(%arg0: i32, %arg1: memref<16x256xbf16, #tpu.memory_space<vmem>>, %arg2: memref<128x128xbf16, #tpu.memory_space<vmem>>, %arg3: memref<1x128xf32, #tpu.memory_space<vmem>>, %arg4: memref<16x128xf32, #tpu.memory_space<vmem>>) attributes {dimension_semantics = [#tpu.dimension_semantics<parallel>], iteration_bounds = array<i64: 1>, scalar_prefetch = 0 : i64, scratch_operands = 0 : i64, tpu.core_type = #tpu.core_type<tc>, window_params = [{transform_indices = @transform_0, window_bounds = array<i64: 16, 256>}, {pipeline_mode = #tpu.pipeline_mode<synchronous>, transform_indices = @transform_1, window_bounds = array<i64: 128, 128>}, {pipeline_mode = #tpu.pipeline_mode<synchronous>, transform_indices = @transform_2, window_bounds = array<i64: 1, 128>}, {transform_indices = @transform_3, window_bounds = array<i64: 16, 128>}]} {
    %c0 = arith.constant 0 : index
    %c0_0 = arith.constant 0 : index
    %0 = vector.load %arg2[%c0, %c0_0] : memref<128x128xbf16, #tpu.memory_space<vmem>>, vector<128x128xbf16>
    %c0_1 = arith.constant 0 : index
    %c0_2 = arith.constant 0 : index
    %1 = vector.load %arg3[%c0_1, %c0_2] : memref<1x128xf32, #tpu.memory_space<vmem>>, vector<1x128xf32>
    %2 = tpu.iota {dimensions = array<i32: 1>} : vector<1x128xi32>
    %c32_i32 = arith.constant 32 : i32
    %3 = vector.broadcast %c32_i32 : i32 to vector<1x128xi32>
    %4 = arith.cmpi slt, %2, %3 : vector<1x128xi32>
    %c32_i32_3 = arith.constant 32 : i32
    %5 = vector.broadcast %c32_i32_3 : i32 to vector<1x128xi32>
    %6 = arith.cmpi sge, %2, %5 : vector<1x128xi32>
    %c34_i32 = arith.constant 34 : i32
    %7 = vector.broadcast %c34_i32 : i32 to vector<1x128xi32>
    %8 = arith.cmpi slt, %2, %7 : vector<1x128xi32>
    %9 = arith.andi %6, %8 : vector<1x128xi1>
    %c0_4 = arith.constant 0 : index
    %c0_5 = arith.constant 0 : index
    %10 = vector.load %arg1[%c0_4, %c0_5] : memref<16x256xbf16, #tpu.memory_space<vmem>>, vector<16x128xbf16>
    %c0_6 = arith.constant 0 : index
    %c128 = arith.constant 128 : index
    %11 = vector.load %arg1[%c0_6, %c128] : memref<16x256xbf16, #tpu.memory_space<vmem>>, vector<16x128xbf16>
    %12 = arith.extf %11 : vector<16x128xbf16> to vector<16x128xf32>
    %cst = arith.constant dense<0.000000e+00> : vector<16x128xf32>
    %13 = tpu.matmul %10, %0, %cst {dimension_numbers = #tpu.dot_dimension_numbers<[1], [0], [0], [1], [0, 0, 1, 1], [], []>} : vector<16x128xbf16>, vector<128x128xbf16>, vector<16x128xf32> -> vector<16x128xf32>
    %14 = vector.broadcast %1 : vector<1x128xf32> to vector<16x128xf32>
    %15 = arith.addf %13, %14 : vector<16x128xf32>
    %16 = math.tanh %15 : vector<16x128xf32>
    %cst_7 = arith.constant 0.000000e+00 : f32
    %17 = vector.shape_cast %4 : vector<1x128xi1> to vector<1x128xi1>
    %18 = vector.broadcast %17 : vector<1x128xi1> to vector<16x128xi1>
    %19 = vector.broadcast %cst_7 : f32 to vector<16x128xf32>
    %20 = arith.select %18, %16, %19 : vector<16x128xi1>, vector<16x128xf32>
    %21 = arith.addf %20, %12 : vector<16x128xf32>
    %22 = arith.truncf %21 : vector<16x128xf32> to vector<16x128xbf16>
    %cst_8 = arith.constant dense<0.000000e+00> : vector<16x128xf32>
    %23 = tpu.matmul %22, %0, %cst_8 {dimension_numbers = #tpu.dot_dimension_numbers<[1], [0], [0], [1], [0, 0, 1, 1], [], []>} : vector<16x128xbf16>, vector<128x128xbf16>, vector<16x128xf32> -> vector<16x128xf32>
    %24 = vector.broadcast %1 : vector<1x128xf32> to vector<16x128xf32>
    %25 = arith.addf %23, %24 : vector<16x128xf32>
    %cst_9 = arith.constant 0.000000e+00 : f32
    %26 = vector.shape_cast %9 : vector<1x128xi1> to vector<1x128xi1>
    %27 = vector.broadcast %26 : vector<1x128xi1> to vector<16x128xi1>
    %28 = vector.broadcast %cst_9 : f32 to vector<16x128xf32>
    %29 = arith.select %27, %25, %28 : vector<16x128xi1>, vector<16x128xf32>
    %30 = math.tanh %25 : vector<16x128xf32>
    %cst_10 = arith.constant 0.000000e+00 : f32
    %31 = vector.shape_cast %4 : vector<1x128xi1> to vector<1x128xi1>
    %32 = vector.broadcast %31 : vector<1x128xi1> to vector<16x128xi1>
    %33 = vector.broadcast %cst_10 : f32 to vector<16x128xf32>
    %34 = arith.select %32, %30, %33 : vector<16x128xi1>, vector<16x128xf32>
    %35 = arith.truncf %34 : vector<16x128xf32> to vector<16x128xbf16>
    %cst_11 = arith.constant dense<0.000000e+00> : vector<16x128xf32>
    %36 = tpu.matmul %35, %0, %cst_11 {dimension_numbers = #tpu.dot_dimension_numbers<[1], [0], [0], [1], [0, 0, 1, 1], [], []>} : vector<16x128xbf16>, vector<128x128xbf16>, vector<16x128xf32> -> vector<16x128xf32>
    %37 = vector.broadcast %1 : vector<1x128xf32> to vector<16x128xf32>
    %38 = arith.addf %36, %37 : vector<16x128xf32>
    %cst_12 = arith.constant -1.000000e+30 : f32
    %39 = vector.shape_cast %9 : vector<1x128xi1> to vector<1x128xi1>
    %40 = vector.broadcast %39 : vector<1x128xi1> to vector<16x128xi1>
    %41 = vector.broadcast %cst_12 : f32 to vector<16x128xf32>
    %42 = arith.select %40, %38, %41 : vector<16x128xi1>, vector<16x128xf32>
    %cst_13 = arith.constant dense<0xFF800000> : vector<16xf32>
    %43 = vector.multi_reduction <maximumf>, %42, %cst_13 [1] : vector<16x128xf32> to vector<16xf32>
    %44 = vector.shape_cast %43 : vector<16xf32> to vector<16x1xf32>
    %c37_i32 = arith.constant 37 : i32
    %45 = vector.broadcast %c37_i32 : i32 to vector<1x128xi32>
    %46 = arith.cmpi eq, %2, %45 : vector<1x128xi32>
    %cst_14 = arith.constant 0.000000e+00 : f32
    %47 = vector.shape_cast %46 : vector<1x128xi1> to vector<1x128xi1>
    %48 = vector.broadcast %47 : vector<1x128xi1> to vector<16x128xi1>
    %49 = vector.broadcast %cst_14 : f32 to vector<16x128xf32>
    %50 = arith.select %48, %12, %49 : vector<16x128xi1>, vector<16x128xf32>
    %cst_15 = arith.constant dense<0.000000e+00> : vector<16xf32>
    %51 = vector.multi_reduction <add>, %50, %cst_15 [1] : vector<16x128xf32> to vector<16xf32>
    %52 = vector.shape_cast %51 : vector<16xf32> to vector<16x1xf32>
    %cst_16 = arith.constant 9.900000e-01 : f32
    %53 = vector.broadcast %cst_16 : f32 to vector<16x1xf32>
    %54 = arith.mulf %53, %44 : vector<16x1xf32>
    %55 = arith.addf %52, %54 : vector<16x1xf32>
    %c0_i32 = arith.constant 0 : i32
    %56 = vector.broadcast %c0_i32 : i32 to vector<1x128xi32>
    %57 = arith.cmpi eq, %2, %56 : vector<1x128xi32>
    %cst_17 = arith.constant 0.000000e+00 : f32
    %58 = vector.shape_cast %57 : vector<1x128xi1> to vector<1x128xi1>
    %59 = vector.broadcast %58 : vector<1x128xi1> to vector<16x128xi1>
    %60 = vector.shape_cast %55 : vector<16x1xf32> to vector<16x1xf32>
    %61 = vector.broadcast %60 : vector<16x1xf32> to vector<16x128xf32>
    %62 = vector.broadcast %cst_17 : f32 to vector<16x128xf32>
    %63 = arith.select %59, %61, %62 : vector<16x128xi1>, vector<16x128xf32>
    %64 = arith.addf %29, %63 : vector<16x128xf32>
    %c0_18 = arith.constant 0 : index
    %c0_19 = arith.constant 0 : index
    %65 = vector.load %arg4[%c0_18, %c0_19] : memref<16x128xf32, #tpu.memory_space<vmem>>, vector<16x128xf32>
    tpu.vector_store %arg4[%c0_18, %c0_19], %64 {strides = array<i32>} : memref<16x128xf32, #tpu.memory_space<vmem>>, vector<16x128xf32>,
    return
  }
  func.func @transform_0(%arg0: i32) -> (i32, i32) {
    %c0_i32 = arith.constant 0 : i32
    %c0_i32_0 = arith.constant 0 : i32
    return %arg0, %c0_i32 : i32, i32
  }
  func.func @transform_1(%arg0: i32) -> (i32, i32) {
    %c0_i32 = arith.constant 0 : i32
    %c0_i32_0 = arith.constant 0 : i32
    %c0_i32_1 = arith.constant 0 : i32
    return %c0_i32, %c0_i32_0 : i32, i32
  }
  func.func @transform_2(%arg0: i32) -> (i32, i32) {
    %c0_i32 = arith.constant 0 : i32
    %c0_i32_0 = arith.constant 0 : i32
    %c0_i32_1 = arith.constant 0 : i32
    return %c0_i32, %c0_i32_0 : i32, i32
  }
  func.func @transform_3(%arg0: i32) -> (i32, i32) {
    %c0_i32 = arith.constant 0 : i32
    %c0_i32_0 = arith.constant 0 : i32
    return %arg0, %c0_i32 : i32, i32
  }
}

</mosaic_0001>

<bundles_post_ra>
// kernel: empirical_target_forward.1
= control target key start
LH: loop header
LB: loop body
LE: loop exit
PB: predicated region body
PF: predicated region fallthrough
CT: control target
= control target key end

     0   :  { %v396_v0 = vmov 0.0   ;;  %vm397_vm0 = vmmov 0   ;;  %v32_v17 = vlaneseq  ;;  %s476_s1 = inlined_call_operand.vmem [shape: bf16[128,128], index: 1, kind: input, shape index: {}]   ;;  %s477_s0 = inlined_call_operand.vmem [shape: bf16[16,256], index: 0, kind: input, shape index: {}]   ;;  %s478_s2 = inlined_call_operand.vmem [shape: f32[1,128], index: 2, kind: input, shape index: {}]   ;;  %s479_s3 = inlined_call_operand.vmem [shape: f32[16,128], index: 3, kind: output, shape index: {}]  }
   0x1   :  { %317 = vmatprep.subr.bf16.mxu0 %v396_v0  ;;  %v379_v1 = vld [vmem:[%s476_s1] sm:$0xff]   ;;  %333 = vmatprep.mubr.msk.bf16.mxu0 %vm397_vm0, %v396_v0  ;;  %v380_v2 = vld [vmem:[%s476_s1 + $0x8] sm:$0xff]   ;;  %v381_v3 = vld [vmem:[%s476_s1 + $0x10] sm:$0xff]  }
   0x2   :  { %337 = vmatprep.subr.bf16.mxu1 %v396_v0  ;;  %353 = vmatprep.mubr.msk.bf16.mxu1 %vm397_vm0, %v396_v0  ;;  %v382_v4 = vld [vmem:[%s476_s1 + $0x18] sm:$0xff]   ;;  %v383_v5 = vld [vmem:[%s476_s1 + $0x20] sm:$0xff]   ;;  %v384_v6 = vld [vmem:[%s476_s1 + $0x28] sm:$0xff]   ;;  %v33_v18 = vand.u32 127, %v32_v17 }
   0x3   :  { %318 = vmatpush3.bf16.msra.mxu0 %v379_v1  ;;  %338 = vmatpush3.bf16.msra.mxu1 %v379_v1  ;;  %v385_v7 = vld [vmem:[%s476_s1 + $0x30] sm:$0xff]   ;;  %v386_v8 = vld [vmem:[%s476_s1 + $0x38] sm:$0xff]   ;;  %v387_v9 = vld [vmem:[%s477_s0] ss:$8 sps:$4 sm:$0xff]  }
   0x4   :  { %319 = vmatprep.subr.bf16.mxu0 %v396_v0  ;;  %339 = vmatprep.subr.bf16.mxu1 %v396_v0  ;;  %v277_v10 = vld [vmem:[%s478_s2] ss:$0 sm:$0xff]  ;;  %v40_v19 = vld [vmem:[%s477_s0 + $0x4] ss:$8 sps:$4 sm:$0xff]   ;;  %vm34_vm1 = vcmp.lt.s32.totalorder %v33_v18, 32  ;;  %vm251_vm3 = vcmp.eq.s32.totalorder %v33_v18, 37 }
   0x5   :  { %v42_v21 = vunpack.c.l.bf16 %v40_v19  ;;  %v43_v22 = vunpack.c.h.bf16 %v40_v19  ;;  %vm287_vm2 = vmpackc.low %vm34_vm1, %vm34_vm1  ;;  %vm35_vm4 = vcmp.ge.s32.totalorder %v33_v18, 32  ;;  %vm36_vm5 = vcmp.lt.s32.totalorder %v33_v18, 34 }
   0x6   :  { %vm458_vm6 = vmand %vm35_vm4, %vm36_vm5  ;;  %vm264_vm7 = vcmp.eq.s32.totalorder %v33_v18, 0 }
   0x7   :  { %320 = vmatpush3.bf16.msra.mxu0 %v380_v2  ;;  %340 = vmatpush3.bf16.msra.mxu1 %v380_v2  ;;  %v254_v38 = vsel %vm251_vm3, %v42_v21, 0.0  ;;  %v255_v39 = vsel %vm251_vm3, %v43_v22, 0.0 }
   0x8   :  { %321 = vmatprep.subr.bf16.mxu0 %v396_v0  ;;  %341 = vmatprep.subr.bf16.mxu1 %v396_v0 }
   0x9   :  { %256 = vadd.xlane.f32.xlu1 %v254_v38 }
   0xb   :  { %322 = vmatpush3.bf16.msra.mxu0 %v381_v3  ;;  %342 = vmatpush3.bf16.msra.mxu1 %v381_v3 }
   0xc   :  { %323 = vmatprep.subr.bf16.mxu0 %v396_v0  ;;  %343 = vmatprep.subr.bf16.mxu1 %v396_v0 }
   0xd   :  { %258 = vadd.xlane.f32.xlu1 %v255_v39 }
   0xf   :  { %324 = vmatpush3.bf16.msra.mxu0 %v382_v4  ;;  %344 = vmatpush3.bf16.msra.mxu1 %v382_v4 }
  0x10   :  { %325 = vmatprep.subr.bf16.mxu0 %v396_v0  ;;  %345 = vmatprep.subr.bf16.mxu1 %v396_v0 }
  0x13   :  { %326 = vmatpush3.bf16.msra.mxu0 %v383_v5  ;;  %346 = vmatpush3.bf16.msra.mxu1 %v383_v5 }
  0x14   :  { %327 = vmatprep.subr.bf16.mxu0 %v396_v0  ;;  %347 = vmatprep.subr.bf16.mxu1 %v396_v0 }
  0x17   :  { %328 = vmatpush3.bf16.msra.mxu0 %v384_v6  ;;  %348 = vmatpush3.bf16.msra.mxu1 %v384_v6 }
  0x18   :  { %329 = vmatprep.subr.bf16.mxu0 %v396_v0  ;;  %349 = vmatprep.subr.bf16.mxu1 %v396_v0 }
  0x1b   :  { %330 = vmatpush3.bf16.msra.mxu0 %v385_v7  ;;  %350 = vmatpush3.bf16.msra.mxu1 %v385_v7 }
  0x1c   :  { %331 = vmatprep.subr.bf16.mxu0 %v396_v0  ;;  %351 = vmatprep.subr.bf16.mxu1 %v396_v0 }
  0x1f   :  { %332 = vmatpush3.bf16.msra.mxu0 %v386_v8  ;;  %352 = vmatpush3.bf16.msra.mxu1 %v386_v8 }
  0x20   :  { %357 = vmatprep.subr.bf16.mxu0 %v396_v0 }
  0x22   :  { %334 = vmatmul.mubr.bf16.vlgmr.msra.gmra.mrb[0].mxu0 %v387_v9 }
  0x23   :  { %358 = vmatpush3.bf16.msra.mxu0 %v379_v1  ;;  %373 = vmatprep.mubr.msk.bf16.mxu0 %vm397_vm0, %v396_v0 }
  0x24   :  { %359 = vmatprep.subr.bf16.mxu0 %v396_v0 }
  0x27   :  { %360 = vmatpush3.bf16.msra.mxu0 %v380_v2 }
  0x28   :  { %361 = vmatprep.subr.bf16.mxu0 %v396_v0 }
  0x2b   :  { %362 = vmatpush3.bf16.msra.mxu0 %v381_v3 }
  0x2c   :  { %363 = vmatprep.subr.bf16.mxu0 %v396_v0 }
  0x2f   :  { %364 = vmatpush3.bf16.msra.mxu0 %v382_v4 }
  0x30   :  { %365 = vmatprep.subr.bf16.mxu0 %v396_v0 }
  0x33   :  { %366 = vmatpush3.bf16.msra.mxu0 %v383_v5 }
  0x34   :  { %367 = vmatprep.subr.bf16.mxu0 %v396_v0 }
  0x37   :  { %368 = vmatpush3.bf16.msra.mxu0 %v384_v6 }
  0x38   :  { %369 = vmatprep.subr.bf16.mxu0 %v396_v0 }
  0x3b   :  { %370 = vmatpush3.bf16.msra.mxu0 %v385_v7 }
  0x3c   :  { %371 = vmatprep.subr.bf16.mxu0 %v396_v0 }
  0x3f   :  { %372 = vmatpush3.bf16.msra.mxu0 %v386_v8 }
  0x96   :  { %v257_v49 = vpop.xlane.xlu1 %256 }
  0x9a   :  { %v259_v54 = vpop.xlane.xlu1 %258 }
  0xf5   :  { %v138_v11 = vpop.f32.mrb[0].mxu0 }
  0xf6   :  { %v139_v12 = vadd.f32 %v277_v10, %v138_v11  ;;  %v335_v13 = vpop.f32.mrb[1].mxu0 }
  0xf7   :  { %v141_v14 = vpop.f32.mrb[2].mxu0 }
  0xf8   :  { %388 = vtanh.f32 %v139_v12  ;;  %v142_v15 = vadd.f32 %v277_v10, %v141_v14  ;;  %v336_v16 = vpop.f32.mrb[3].mxu0 }
  0xfa   :  { %390 = vtanh.f32 %v142_v15 }
 0x102   :  { %v389_v20 = vpop.eup %388 }
 0x103   :  { %v149_v23 = vsel %vm34_vm1, %v389_v20, 0.0 }
 0x104   :  { %v391_v24 = vpop.eup %390  ;;  %v151_v26 = vadd.f32 %v149_v23, %v42_v21 }
 0x105   :  { %v150_v25 = vsel %vm34_vm1, %v391_v24, 0.0 }
 0x106   :  { %v152_v27 = vadd.f32 %v150_v25, %v43_v22 }
 0x108   :  { %v153_v28 = vpack.c.bf16 %v152_v27, %v151_v26 }
 0x10a   :  { %354 = vmatmul.mubr.bf16.vlgmr.msra.gmra.mrb[0].mxu1 %v153_v28 }
 0x1dd   :  { %v188_v29 = vpop.f32.mrb[0].mxu1 }
 0x1de   :  { %v189_v30 = vadd.f32 %v277_v10, %v188_v29  ;;  %v355_v31 = vpop.f32.mrb[1].mxu1 }
 0x1df   :  { %v191_v32 = vpop.f32.mrb[2].mxu1 }
 0x1e0   :  { %v192_v33 = vadd.f32 %v277_v10, %v191_v32  ;;  %v356_v34 = vpop.f32.mrb[3].mxu1  ;;  %392 = vtanh.f32 %v189_v30  ;;  %v197_v55 = vsel %vm458_vm6, %v189_v30, 0.0 }
 0x1e2   :  { %394 = vtanh.f32 %v192_v33  ;;  %v198_v60 = vsel %vm458_vm6, %v192_v33, 0.0 }
 0x1ea   :  { %v393_v35 = vpop.eup %392 }
 0x1ec   :  { %v395_v36 = vpop.eup %394 }
 0x1ed   :  { %v288_v37 = vpack.c.bf16 %v395_v36, %v393_v35 }
 0x1ef   :  { %374 = vmatmul.mubr.msk.bf16.vlgmr.msra.gmra.mrb[4].mxu0 %vm287_vm2, %v288_v37 }
 0x2c2   :  { %v238_v40 = vpop.f32.mrb[4].mxu0 }
 0x2c3   :  { %v239_v41 = vadd.f32 %v277_v10, %v238_v40  ;;  %v375_v42 = vpop.f32.mrb[5].mxu0 }
 0x2c4   :  { %v241_v44 = vpop.f32.mrb[6].mxu0 }
 0x2c5   :  { %v242_v45 = vadd.f32 %v277_v10, %v241_v44  ;;  %v376_v46 = vpop.f32.mrb[7].mxu0  ;;  %v245_v47 = vsel %vm458_vm6, %v239_v41, -1e+30 }
 0x2c6   :  { %247 = vmax.xlane.f32.xlu0 %v245_v47 }
 0x2c7   :  { %v246_v48 = vsel %vm458_vm6, %v242_v45, -1e+30 }
 0x2ca   :  { %249 = vmax.xlane.f32.xlu0 %v246_v48 }
 0x353   :  { %v248_v50 = vpop.xlane.xlu0 %247 }
 0x354   :  { %v260_v51 = vmul.f32 0.99, %v248_v50 }
 0x356   :  { %v262_v52 = vadd.f32 %v260_v51, %v257_v49 }
 0x357   :  { %v250_v53 = vpop.xlane.xlu0 %249 }
 0x358   :  { %v267_v56 = vsel %vm264_vm7, %v262_v52, 0.0  ;;  %v261_v57 = vmul.f32 0.99, %v250_v53 }
 0x359   :  { %v269_v58 = vadd.f32 %v267_v56, %v197_v55 }
 0x35a   :  { %v263_v59 = vadd.f32 %v261_v57, %v259_v54 }
 0x35b   :  { %271 = vst [vmem:[%s479_s3] sm:$0xff] %v269_v58 }
 0x35c   :  { %v268_v61 = vsel %vm264_vm7, %v263_v59, 0.0 }
 0x35d   :  { %v270_v62 = vadd.f32 %v268_v61, %v198_v60 }
 0x35f   :  { %272 = vst [vmem:[%s479_s3 + $0x8] sm:$0xff] %v270_v62 }

</bundles_post_ra>
